<compile_context>
chip_gen: v5e
topology: v5e:2x2
jax: 0.10.0
libtpu: 0.0.40
codegen_flags: <defaults>
</compile_context>

<pallas_src>
import functools

import jax
import jax.numpy as jnp
from jax.experimental import pallas as pl
from jax.experimental.pallas import tpu as pltpu

_LANES = 128


def _sublane_multiple(dtype) -> int:
    # Mosaic block-shape rule for the second-minor dim: 8 for 4-byte dtypes, 16 for 2-byte,
    # 32 for 1-byte (bool/int8).
    size = jnp.dtype(dtype).itemsize
    return {1: 32, 2: 16}.get(size, 8)


def _default_num_splits() -> int:
    # Two resident accumulator blocks (one per TensorCore) only pay off on 2-TC chips (v7x);
    # on v5e/v6e a leading "parallel" axis of 2 is just a serial loop.
    try:
        kind = jax.devices()[0].device_kind.lower()
        return 2 if "v7" in kind else 1
    except Exception:
        return 1


def _bce_dice_partial_kernel(pr_ref, gt_ref, acc_ref, *, csize, trips):
    """Accumulate per-lane partial sums [tp, sum(p), sum(gt), bce-sum] into the resident output."""
    step = pl.program_id(1)  # reduction axis

    @pl.when(step == 0)
    def _():
        acc_ref[...] = jnp.zeros_like(acc_ref)

    def body(t, carry):
        tp, sp, sg, bce = carry
        r0 = pl.multiple_of(t * csize, csize)
        x = pr_ref[pl.ds(r0, csize), :].astype(jnp.float32)
        z = gt_ref[pl.ds(r0, csize), :].astype(jnp.float32)

        # Exact sigmoid via tanh: one EUP op, no reciprocal, no approximation error.
        p = 0.5 + 0.5 * jnp.tanh(0.5 * x)
        # BCEWithLogits(x, z) = max(x,0) - x*z + log1p(exp(-|x|))
        #                     = max(x,0) - x*z - log(where(x>=0, p, 1-p))
        # The selected operand is always >= 0.5, so the log is well behaved.
        q = jnp.where(x >= 0.0, p, 1.0 - p)
        b = jnp.maximum(x, 0.0) - x * z - jnp.log(q)

        def fold(v):
            # (csize,128) -> (8,128): sum over the major axis only -> pure VPU vreg adds,
            # no cross-lane XLU reduction in the hot loop.
            return jnp.sum(v.reshape(csize // 8, 8, v.shape[-1]), axis=0)

        return (tp + fold(z * p), sp + fold(p), sg + fold(z), bce + fold(b))

    zeros = jnp.zeros((8, _LANES), jnp.float32)
    tp, sp, sg, bce = jax.lax.fori_loop(
        0, trips, body, (zeros, zeros, zeros, zeros), unroll=min(trips, 8))

    acc_ref[0, 0, :, :] += tp
    acc_ref[0, 1, :, :] += sp
    acc_ref[0, 2, :, :] += sg
    acc_ref[0, 3, :, :] += bce


def _jax_partial_sums(x, z):
    """Tail path: same partial sums as the kernel, in plain JAX (small slices only)."""
    x = x.astype(jnp.float32)
    z = z.astype(jnp.float32)
    p = jax.nn.sigmoid(x)
    b = jnp.maximum(x, 0.0) - x * z + jnp.log1p(jnp.exp(-jnp.abs(x)))
    return jnp.sum(z * p), jnp.sum(p), jnp.sum(z), jnp.sum(b)


def bce_dice_loss(y_pr, y_gt, *, eps=1e-7, lambda_dice=1.0, lambda_bce=1.0,
                  block_rows=8192, num_splits=None):
    """Equivalent of BCEDiceLoss(eps, activation='sigmoid', lambda_dice, lambda_bce)(y_pr, y_gt)."""
    # TODO(synk): f_score's softmax2d / threshold options are not implemented (BCEDiceLoss's
    # defaults use sigmoid activation and threshold=None, which is what this kernel computes).
    assert y_pr.shape == y_gt.shape
    n = int(y_pr.size)
    if num_splits is None:
        num_splits = _default_num_splits()

    pr_flat = y_pr.reshape(-1)   # free
    gt_flat = y_gt.reshape(-1)   # free

    sub = max(_sublane_multiple(pr_flat.dtype), _sublane_multiple(gt_flat.dtype))
    rem = n % _LANES
    rows_full = n // _LANES

    # Rows covered by the kernel: per-split row count aligned to the sublane multiple, tiled
    # with near-maximal blocks (brows ~ per_split / ceil(per_split / block_rows)).
    unit = num_splits * sub
    aligned = (rows_full // unit) * unit
    per_split = aligned // num_splits
    if per_split > 0:
        steps = max(1, -(-per_split // block_rows))             # ceil division
        brows = max(sub, (per_split // steps) // sub * sub)     # multiple of sub, <= block_rows
        covered = num_splits * steps * brows
    else:
        steps = 0
        brows = 0
        covered = 0

    if covered > 0:
        if rem == 0:
            # Free lane-dense view of the whole tensor; the grid reads only the first `covered`
            # rows, any leftover rows go through the small JAX tail below.
            pr2 = pr_flat.reshape(rows_full, _LANES)
            gt2 = gt_flat.reshape(rows_full, _LANES)
        else:
            # Rare: element count not a multiple of 128 -> a lane-dense 2D view of the prefix
            # requires one prefix copy. NCHW segmentation tensors essentially never hit this.
            kept = covered * _LANES
            pr2 = pr_flat[:kept].reshape(covered, _LANES)
            gt2 = gt_flat[:kept].reshape(covered, _LANES)

        # Row sub-chunk processed per fori_loop iteration inside the kernel: the largest divisor
        # of brows that is <= 64 rows and a multiple of the sublane unit (bounds live ranges so
        # no (brows,128) temporaries are materialized in VMEM).
        csize = sub
        cand = (min(64, brows) // sub) * sub
        while cand >= sub:
            if brows % cand == 0:
                csize = cand
                break
            cand -= sub
        trips = brows // csize

        def in_map(c, i):
            return (c * steps + i, 0)

        def out_map(c, i):
            return (c, 0, 0, 0)

        # Explicit VMEM budget: double-buffered input pipeline + headroom for temporaries.
        in_buf_bytes = 2 * brows * _LANES * (jnp.dtype(pr2.dtype).itemsize
                                             + jnp.dtype(gt2.dtype).itemsize)
        vmem_limit = int(min(96 << 20, in_buf_bytes + (16 << 20)))

        parts = pl.pallas_call(
            functools.partial(_bce_dice_partial_kernel, csize=csize, trips=trips),
            out_shape=jax.ShapeDtypeStruct((num_splits, 4, 8, _LANES), jnp.float32),
            grid_spec=pltpu.PrefetchScalarGridSpec(
                num_scalar_prefetch=0,
                grid=(num_splits, steps),
                in_specs=[
                    pl.BlockSpec((brows, _LANES), in_map),
                    pl.BlockSpec((brows, _LANES), in_map),
                ],
                out_specs=pl.BlockSpec((1, 4, 8, _LANES), out_map),
            ),
            compiler_params=pltpu.CompilerParams(
                dimension_semantics=("parallel", "arbitrary"),
                vmem_limit_bytes=vmem_limit,
            ),
        )(pr2, gt2)

        sums = jnp.sum(parts, axis=(0, 2, 3))            # single tiny downstream reduction
        tp, sp, sg, bce_sum = sums[0], sums[1], sums[2], sums[3]
    else:
        # Degenerate tiny input: everything goes through the JAX tail below.
        tp = sp = sg = bce_sum = jnp.float32(0.0)

    # Tail: leftover rows (< one chunk) plus the ragged < 128-element remainder, reduced in
    # plain JAX over a small slice (never a full-tensor copy).
    tail_start = covered * _LANES
    if tail_start < n:
        t_tp, t_sp, t_sg, t_bce = _jax_partial_sums(pr_flat[tail_start:], gt_flat[tail_start:])
        tp = tp + t_tp
        sp = sp + t_sp
        sg = sg + t_sg
        bce_sum = bce_sum + t_bce

    # f_score (beta=1, threshold=None): (2tp+eps)/(2tp+fn+fp+eps) = (2tp+eps)/(sp+sg+eps)
    score = (2.0 * tp + eps) / (sp + sg + eps)
    dice_l = 1.0 - score
    bce = bce_sum / n                                    # n is a trace-time constant
    return lambda_dice * dice_l + lambda_bce * bce


def _reference(y_pr, y_gt, eps=1e-7, lambda_dice=1.0, lambda_bce=1.0):
    x = y_pr.astype(jnp.float32)
    z = y_gt.astype(jnp.float32)
    p = jax.nn.sigmoid(x)
    tp = jnp.sum(z * p)
    fp = jnp.sum(p) - tp
    fn = jnp.sum(z) - tp
    score = (2.0 * tp + eps) / (2.0 * tp + fn + fp + eps)
    dice_l = 1.0 - score
    bce = jnp.mean(jnp.maximum(x, 0.0) - x * z + jnp.log1p(jnp.exp(-jnp.abs(x))))
    return lambda_dice * dice_l + lambda_bce * bce


if __name__ == "__main__":
    key = jax.random.PRNGKey(0)
    k1, k2, k3, k4 = jax.random.split(key, 4)

    loss_fn = jax.jit(lambda pr, gt: bce_dice_loss(pr, gt))

    # Case 1: small NCHW segmentation-style f32 logits / f32 binary masks.
    y_pr = jax.random.normal(k1, (2, 4, 16, 16), dtype=jnp.float32)              # logits
    y_gt = (jax.random.uniform(k2, (2, 4, 16, 16)) > 0.5).astype(jnp.float32)    # binary targets
    loss = jax.block_until_ready(loss_fn(y_pr, y_gt))
    ref = _reference(y_pr, y_gt)
    assert jnp.allclose(loss, ref, rtol=1e-4, atol=1e-5), (loss, ref)

    # Case 2: bf16 logits streamed in their native dtype with a row count that is not
    # block-aligned (exercises the pad-free aligned-prefix kernel + small JAX tail path).
    y_pr2 = jax.random.normal(k3, (1, 5, 24, 128), dtype=jnp.bfloat16)
    y_gt2 = (jax.random.uniform(k4, (1, 5, 24, 128)) > 0.5).astype(jnp.float32)
    loss2 = jax.block_until_ready(loss_fn(y_pr2, y_gt2))
    ref2 = _reference(y_pr2, y_gt2)
    assert jnp.allclose(loss2, ref2, rtol=1e-4, atol=1e-5), (loss2, ref2)

    print("KERNEL_OK")
</pallas_src>

<mosaic_0001>
module attributes {stable_mosaic.version = 11 : i64} {
  func.func @_bce_dice_partial_kernel(%arg0: i32, %arg1: i32, %arg2: memref<16x128xf32, #tpu.memory_space<vmem>>, %arg3: memref<16x128xf32, #tpu.memory_space<vmem>>, %arg4: memref<1x4x8x128xf32, #tpu.memory_space<vmem>>) attributes {dimension_semantics = [#tpu.dimension_semantics<parallel>, #tpu.dimension_semantics<arbitrary>], iteration_bounds = array<i64: 1, 1>, scalar_prefetch = 0 : i64, scratch_operands = 0 : i64, tpu.core_type = #tpu.core_type<tc>, window_params = [{transform_indices = @transform_0, window_bounds = array<i64: 16, 128>}, {transform_indices = @transform_1, window_bounds = array<i64: 16, 128>}, {transform_indices = @transform_2, window_bounds = array<i64: 1, 4, 8, 128>}]} {
    %c0_i32 = arith.constant 0 : i32
    %0 = arith.cmpi eq, %arg1, %c0_i32 : i32
    %1 = arith.extui %0 : i1 to i32
    %c0_i32_0 = arith.constant 0 : i32
    %2 = arith.cmpi ne, %1, %c0_i32_0 : i32
    scf.if %2 {
      %cst_42 = arith.constant 0.000000e+00 : f32
      %65 = vector.broadcast %cst_42 : f32 to vector<1x4x8x128xf32>
      %c0_43 = arith.constant 0 : index
      %c0_44 = arith.constant 0 : index
      %c0_45 = arith.constant 0 : index
      %c0_46 = arith.constant 0 : index
      %66 = vector.load %arg4[%c0_43, %c0_44, %c0_45, %c0_46] : memref<1x4x8x128xf32, #tpu.memory_space<vmem>>, vector<1x4x8x128xf32>
      tpu.vector_store %arg4[%c0_43, %c0_44, %c0_45, %c0_46], %65 {strides = array<i32>} : memref<1x4x8x128xf32, #tpu.memory_space<vmem>>, vector<1x4x8x128xf32>,
    } else {
    }
    %cst = arith.constant 0.000000e+00 : f32
    %3 = vector.broadcast %cst : f32 to vector<8x128xf32>
    %c0_i32_1 = arith.constant 0 : i32
    %c16_i32 = arith.constant 16 : i32
    %4 = arith.muli %c0_i32_1, %c16_i32 : i32
    %5 = tpu.assume_multiple %4, 16 : i32
    %6 = arith.index_cast %5 : i32 to index
    %c0 = arith.constant 0 : index
    %7 = vector.load %arg2[%6, %c0] : memref<16x128xf32, #tpu.memory_space<vmem>>, vector<16x128xf32>
    %8 = arith.index_cast %5 : i32 to index
    %c0_2 = arith.constant 0 : index
    %9 = vector.load %arg3[%8, %c0_2] : memref<16x128xf32, #tpu.memory_space<vmem>>, vector<16x128xf32>
    %cst_3 = arith.constant 5.000000e-01 : f32
    %10 = vector.broadcast %cst_3 : f32 to vector<16x128xf32>
    %11 = arith.mulf %10, %7 : vector<16x128xf32>
    %12 = math.tanh %11 : vector<16x128xf32>
    %cst_4 = arith.constant 5.000000e-01 : f32
    %13 = vector.broadcast %cst_4 : f32 to vector<16x128xf32>
    %14 = arith.mulf %13, %12 : vector<16x128xf32>
    %cst_5 = arith.constant 5.000000e-01 : f32
    %15 = vector.broadcast %cst_5 : f32 to vector<16x128xf32>
    %16 = arith.addf %15, %14 : vector<16x128xf32>
    %cst_6 = arith.constant 0.000000e+00 : f32
    %17 = vector.broadcast %cst_6 : f32 to vector<16x128xf32>
    %18 = arith.cmpf oge, %7, %17 : vector<16x128xf32>
    %cst_7 = arith.constant 1.000000e+00 : f32
    %19 = vector.broadcast %cst_7 : f32 to vector<16x128xf32>
    %20 = arith.subf %19, %16 : vector<16x128xf32>
    %21 = arith.select %18, %16, %20 : vector<16x128xi1>, vector<16x128xf32>
    %cst_8 = arith.constant 0.000000e+00 : f32
    %22 = vector.broadcast %cst_8 : f32 to vector<16x128xf32>
    %23 = arith.maximumf %7, %22 : vector<16x128xf32>
    %24 = arith.mulf %7, %9 : vector<16x128xf32>
    %25 = arith.subf %23, %24 : vector<16x128xf32>
    %26 = math.log %21 : vector<16x128xf32>
    %27 = arith.subf %25, %26 : vector<16x128xf32>
    %28 = arith.mulf %9, %16 : vector<16x128xf32>
    %29 = vector.shape_cast %28 : vector<16x128xf32> to vector<2x8x128xf32>
    %cst_9 = arith.constant dense<0.000000e+00> : vector<8x128xf32>
    %30 = vector.multi_reduction <add>, %29, %cst_9 [0] : vector<2x8x128xf32> to vector<8x128xf32>
    %31 = arith.addf %3, %30 : vector<8x128xf32>
    %32 = vector.shape_cast %16 : vector<16x128xf32> to vector<2x8x128xf32>
    %cst_10 = arith.constant dense<0.000000e+00> : vector<8x128xf32>
    %33 = vector.multi_reduction <add>, %32, %cst_10 [0] : vector<2x8x128xf32> to vector<8x128xf32>
    %34 = arith.addf %3, %33 : vector<8x128xf32>
    %35 = vector.shape_cast %9 : vector<16x128xf32> to vector<2x8x128xf32>
    %cst_11 = arith.constant dense<0.000000e+00> : vector<8x128xf32>
    %36 = vector.multi_reduction <add>, %35, %cst_11 [0] : vector<2x8x128xf32> to vector<8x128xf32>
    %37 = arith.addf %3, %36 : vector<8x128xf32>
    %38 = vector.shape_cast %27 : vector<16x128xf32> to vector<2x8x128xf32>
    %cst_12 = arith.constant dense<0.000000e+00> : vector<8x128xf32>
    %39 = vector.multi_reduction <add>, %38, %cst_12 [0] : vector<2x8x128xf32> to vector<8x128xf32>
    %40 = arith.addf %3, %39 : vector<8x128xf32>
    %c1_i32 = arith.constant 1 : i32
    %c0_13 = arith.constant 0 : index
    %c0_14 = arith.constant 0 : index
    %c0_15 = arith.constant 0 : index
    %c0_16 = arith.constant 0 : index
    %41 = vector.load %arg4[%c0_13, %c0_14, %c0_15, %c0_16] : memref<1x4x8x128xf32, #tpu.memory_space<vmem>>, vector<1x1x8x128xf32>
    %42 = vector.shape_cast %41 : vector<1x1x8x128xf32> to vector<8x128xf32>
    %43 = arith.addf %42, %31 : vector<8x128xf32>
    %c0_17 = arith.constant 0 : index
    %c0_18 = arith.constant 0 : index
    %c0_19 = arith.constant 0 : index
    %c0_20 = arith.constant 0 : index
    %44 = vector.load %arg4[%c0_17, %c0_18, %c0_19, %c0_20] : memref<1x4x8x128xf32, #tpu.memory_space<vmem>>, vector<1x1x8x128xf32>
    %45 = vector.shape_cast %44 : vector<1x1x8x128xf32> to vector<8x128xf32>
    %46 = vector.shape_cast %43 : vector<8x128xf32> to vector<1x1x8x128xf32>
    tpu.vector_store %arg4[%c0_17, %c0_18, %c0_19, %c0_20], %46 {strides = array<i32>} : memref<1x4x8x128xf32, #tpu.memory_space<vmem>>, vector<1x1x8x128xf32>,
    %c0_21 = arith.constant 0 : index
    %c1 = arith.constant 1 : index
    %c0_22 = arith.constant 0 : index
    %c0_23 = arith.constant 0 : index
    %47 = vector.load %arg4[%c0_21, %c1, %c0_22, %c0_23] : memref<1x4x8x128xf32, #tpu.memory_space<vmem>>, vector<1x1x8x128xf32>
    %48 = vector.shape_cast %47 : vector<1x1x8x128xf32> to vector<8x128xf32>
    %49 = arith.addf %48, %34 : vector<8x128xf32>
    %c0_24 = arith.constant 0 : index
    %c1_25 = arith.constant 1 : index
    %c0_26 = arith.constant 0 : index
    %c0_27 = arith.constant 0 : index
    %50 = vector.load %arg4[%c0_24, %c1_25, %c0_26, %c0_27] : memref<1x4x8x128xf32, #tpu.memory_space<vmem>>, vector<1x1x8x128xf32>
    %51 = vector.shape_cast %50 : vector<1x1x8x128xf32> to vector<8x128xf32>
    %52 = vector.shape_cast %49 : vector<8x128xf32> to vector<1x1x8x128xf32>
    tpu.vector_store %arg4[%c0_24, %c1_25, %c0_26, %c0_27], %52 {strides = array<i32>} : memref<1x4x8x128xf32, #tpu.memory_space<vmem>>, vector<1x1x8x128xf32>,
    %c0_28 = arith.constant 0 : index
    %c2 = arith.constant 2 : index
    %c0_29 = arith.constant 0 : index
    %c0_30 = arith.constant 0 : index
    %53 = vector.load %arg4[%c0_28, %c2, %c0_29, %c0_30] : memref<1x4x8x128xf32, #tpu.memory_space<vmem>>, vector<1x1x8x128xf32>
    %54 = vector.shape_cast %53 : vector<1x1x8x128xf32> to vector<8x128xf32>
    %55 = arith.addf %54, %37 : vector<8x128xf32>
    %c0_31 = arith.constant 0 : index
    %c2_32 = arith.constant 2 : index
    %c0_33 = arith.constant 0 : index
    %c0_34 = arith.constant 0 : index
    %56 = vector.load %arg4[%c0_31, %c2_32, %c0_33, %c0_34] : memref<1x4x8x128xf32, #tpu.memory_space<vmem>>, vector<1x1x8x128xf32>
    %57 = vector.shape_cast %56 : vector<1x1x8x128xf32> to vector<8x128xf32>
    %58 = vector.shape_cast %55 : vector<8x128xf32> to vector<1x1x8x128xf32>
    tpu.vector_store %arg4[%c0_31, %c2_32, %c0_33, %c0_34], %58 {strides = array<i32>} : memref<1x4x8x128xf32, #tpu.memory_space<vmem>>, vector<1x1x8x128xf32>,
    %c0_35 = arith.constant 0 : index
    %c3 = arith.constant 3 : index
    %c0_36 = arith.constant 0 : index
    %c0_37 = arith.constant 0 : index
    %59 = vector.load %arg4[%c0_35, %c3, %c0_36, %c0_37] : memref<1x4x8x128xf32, #tpu.memory_space<vmem>>, vector<1x1x8x128xf32>
    %60 = vector.shape_cast %59 : vector<1x1x8x128xf32> to vector<8x128xf32>
    %61 = arith.addf %60, %40 : vector<8x128xf32>
    %c0_38 = arith.constant 0 : index
    %c3_39 = arith.constant 3 : index
    %c0_40 = arith.constant 0 : index
    %c0_41 = arith.constant 0 : index
    %62 = vector.load %arg4[%c0_38, %c3_39, %c0_40, %c0_41] : memref<1x4x8x128xf32, #tpu.memory_space<vmem>>, vector<1x1x8x128xf32>
    %63 = vector.shape_cast %62 : vector<1x1x8x128xf32> to vector<8x128xf32>
    %64 = vector.shape_cast %61 : vector<8x128xf32> to vector<1x1x8x128xf32>
    tpu.vector_store %arg4[%c0_38, %c3_39, %c0_40, %c0_41], %64 {strides = array<i32>} : memref<1x4x8x128xf32, #tpu.memory_space<vmem>>, vector<1x1x8x128xf32>,
    return
  }
  func.func @transform_0(%arg0: i32, %arg1: i32) -> (i32, i32) {
    %c1_i32 = arith.constant 1 : i32
    %0 = arith.muli %arg0, %c1_i32 : i32
    %1 = arith.addi %0, %arg1 : i32
    %c0_i32 = arith.constant 0 : i32
    %c0_i32_0 = arith.constant 0 : i32
    return %1, %c0_i32 : i32, i32
  }
  func.func @transform_1(%arg0: i32, %arg1: i32) -> (i32, i32) {
    %c1_i32 = arith.constant 1 : i32
    %0 = arith.muli %arg0, %c1_i32 : i32
    %1 = arith.addi %0, %arg1 : i32
    %c0_i32 = arith.constant 0 : i32
    %c0_i32_0 = arith.constant 0 : i32
    return %1, %c0_i32 : i32, i32
  }
  func.func @transform_2(%arg0: i32, %arg1: i32) -> (i32, i32, i32, i32) {
    %c0_i32 = arith.constant 0 : i32
    %c0_i32_0 = arith.constant 0 : i32
    %c0_i32_1 = arith.constant 0 : i32
    %c0_i32_2 = arith.constant 0 : i32
    return %arg0, %c0_i32, %c0_i32_0, %c0_i32_1 : i32, i32, i32, i32
  }
}

</mosaic_0001>

<bundles_post_ra>
// kernel: _lambda_.1
= control target key start
LH: loop header
LB: loop body
LE: loop exit
PB: predicated region body
PF: predicated region fallthrough
CT: control target
= control target key end

     0   :  { %s188_s0 = inlined_call_operand.vmem [shape: f32[16,128], index: 0, kind: input, shape index: {}]   ;;  %s189_s1 = inlined_call_operand.vmem [shape: f32[16,128], index: 1, kind: input, shape index: {}]   ;;  %s190_s2 = inlined_call_operand.vmem [shape: f32[1,4,8,128], index: 2, kind: output, shape index: {}]  }
   0x1   :  { %v63_v0 = vld [vmem:[%s188_s0] sm:$0xff]  ;;  %v64_v1 = vld [vmem:[%s188_s0 + $0x8] sm:$0xff] }
   0x2   :  { %v65_v2 = vld [vmem:[%s189_s1] sm:$0xff]  ;;  %v66_v3 = vld [vmem:[%s189_s1 + $0x8] sm:$0xff]  ;;  %v67_v4 = vmul.f32 0.5, %v63_v0  ;;  %v68_v5 = vmul.f32 0.5, %v64_v1  ;;  %vm75_vm0 = vcmp.ge.f32.partialorder %v63_v0, 0.0  ;;  %vm76_vm1 = vcmp.ge.f32.partialorder %v64_v1, 0.0 }
   0x3   :  { %v99_v6 = vadd.f32 %v66_v3, %v65_v2  ;;  %v81_v21 = vmax.f32 %v63_v0, 0.0  ;;  %v83_v22 = vmul.f32 %v65_v2, %v63_v0  ;;  %v82_v23 = vmax.f32 %v64_v1, 0.0 }
   0x4   :  { %141 = vtanh.f32 %v67_v4  ;;  %v84_v24 = vmul.f32 %v66_v3, %v64_v1 }
   0x5   :  { %143 = vtanh.f32 %v68_v5  ;;  %137 = vst [vmem:[%s190_s2 + $0x10] sm:$0xff] %v99_v6  ;;  %v85_v25 = vsub.f32 %v81_v21, %v83_v22 }
   0x6   :  { %v86_v27 = vsub.f32 %v82_v23, %v84_v24 }
   0xa   :  { %v142_v7 = vpop.eup %141 }
   0xb   :  { %v144_v8 = vpop.eup %143  ;;  %v71_v9 = vmul.f32 0.5, %v142_v7 }
   0xc   :  { %v72_v10 = vmul.f32 0.5, %v144_v8 }
   0xd   :  { %v73_v11 = vadd.f32 0.5, %v71_v9 }
   0xe   :  { %v74_v12 = vadd.f32 0.5, %v72_v10 }
   0xf   :  { %v93_v13 = vmul.f32 %v73_v11, %v65_v2  ;;  %v77_v14 = vsub.f32 1.0, %v73_v11 }
  0x10   :  { %v94_v15 = vmul.f32 %v74_v12, %v66_v3  ;;  %v97_v16 = vadd.f32 %v74_v12, %v73_v11  ;;  %v78_v17 = vsub.f32 1.0, %v74_v12 }
  0x11   :  { %v79_v18 = vsel %vm75_vm0, %v73_v11, %v77_v14 }
  0x12   :  { %v95_v19 = vadd.f32 %v94_v15, %v93_v13  ;;  %v80_v20 = vsel %vm76_vm1, %v74_v12, %v78_v17  ;;  %145 = vlog2.f32 %v79_v18  ;;  %135 = vst [vmem:[%s190_s2 + $0x8] sm:$0xff] %v97_v16 }
  0x13   :  { %147 = vlog2.f32 %v80_v20 }
  0x14   :  { %105 = vst [vmem:[%s190_s2] sm:$0xff] %v95_v19 }
  0x18   :  { %v146_v26 = vpop.eup %145 }
  0x19   :  { %v148_v28 = vpop.eup %147  ;;  %v88_v29 = vmul.f32 0.6931472, %v146_v26 }
  0x1a   :  { %v90_v30 = vmul.f32 0.6931472, %v148_v28 }
  0x1b   :  { %v91_v31 = vsub.f32 %v85_v25, %v88_v29 }
  0x1c   :  { %v92_v32 = vsub.f32 %v86_v27, %v90_v30 }
  0x1e   :  { %v101_v33 = vadd.f32 %v92_v32, %v91_v31 }
  0x20   :  { %139 = vst [vmem:[%s190_s2 + $0x18] sm:$0xff] %v101_v33 }

</bundles_post_ra>
